<compile_context>
chip_gen: v6e
topology: v6e:2x2x1
jax: 0.10.0
libtpu: 0.0.40
codegen_flags: <defaults>
</compile_context>

<pallas_src>
import functools

import jax
import jax.numpy as jnp
from jax.experimental import pallas as pl
from jax.experimental.pallas import tpu as pltpu


def _round_up(x, m):
    return (x + m - 1) // m * m


def generative_kernel(labels_ref, eps_ref, w1_ref, bn_ref, w2_ref, out_ref,
                      *, one_col):
    """One feature-tile of the Generative forward.

    labels_ref : [B, 1]  int32   labels pre-shifted by +noise_dim
    eps_ref    : [B, Kp] f32     noise in lanes [0:noise_dim), 1.0 at lane
                                 noise_dim+num_classes (folds b1), 0 elsewhere
    w1_ref     : [Kp, Hp] f32    fused fc1 weight (noise rows + one-hot rows
                                 + b1 row)
    bn_ref     : [8, Hp]  f32    row0 = gamma, row1 = beta (zero padded)
    w2_ref     : [Hp, TN] bf16   fc2 weight tile, row `one_col` holds b2
    out_ref    : [B, TN]  f32    output tile (lane-dense, unmasked store)
    """
    B, Kp = eps_ref.shape

    # One-hot built directly in the concat lanes -> cat(eps, onehot) without
    # materializing a concat; fc1 becomes a single fused MXU pass.
    lane = jax.lax.broadcasted_iota(jnp.int32, (B, Kp), 1)
    z_in = eps_ref[...] + (lane == labels_ref[...]).astype(jnp.float32)

    # fc1 (bias folded into w1 via the always-1 noise lane).
    z1 = jnp.dot(z_in, w1_ref[...], preferred_element_type=jnp.float32)

    # BatchNorm1d, training mode: batch mean, biased variance, eps=1e-5.
    # Kept in f32 on the VPU/EUP (v5e has no bf16 VALU/EUP).
    mean = jnp.mean(z1, axis=0, keepdims=True)
    var = jnp.mean(jnp.square(z1 - mean), axis=0, keepdims=True)
    zn = (z1 - mean) * jax.lax.rsqrt(var + 1e-5)
    zn = zn * bn_ref[0:1, :] + bn_ref[1:2, :]          # gamma, beta
    h = jnp.maximum(zn, 0.0)                           # ReLU

    # Plant the always-1 hidden lane that folds b2 into W2's row `one_col`.
    hlane = jax.lax.broadcasted_iota(jnp.int32, h.shape, 1)
    h = jnp.where(hlane == one_col, 1.0, h)

    # fc2 feature tile: bf16 weight stream, f32 accumulate, lane-dense store.
    out_ref[...] = jnp.dot(h.astype(jnp.bfloat16), w2_ref[...],
                           preferred_element_type=jnp.float32)


def init_raw_params(key, noise_dim, num_classes, hidden_dim, feature_dim):
    """Deterministic init mimicking nn.Linear / nn.BatchNorm1d defaults."""
    k1, k2, k3, k4 = jax.random.split(key, 4)
    in1 = noise_dim + num_classes
    bound1 = 1.0 / jnp.sqrt(in1)
    bound2 = 1.0 / jnp.sqrt(hidden_dim)
    return {
        "w1": jax.random.uniform(k1, (in1, hidden_dim), jnp.float32, -bound1, bound1),
        "b1": jax.random.uniform(k2, (hidden_dim,), jnp.float32, -bound1, bound1),
        "gamma": jnp.ones((hidden_dim,), jnp.float32),
        "beta": jnp.zeros((hidden_dim,), jnp.float32),
        "w2": jax.random.uniform(k3, (hidden_dim, feature_dim), jnp.float32, -bound2, bound2),
        "b2": jax.random.uniform(k4, (feature_dim,), jnp.float32, -bound2, bound2),
    }


def pack_params(raw, noise_dim, num_classes, batch_hint=8):
    """Pad / fold / pre-tile parameters for the kernel."""
    hidden_dim = raw["w1"].shape[1]
    feature_dim = raw["w2"].shape[1]
    k_in = noise_dim + num_classes

    Kp = _round_up(k_in + 1, 8)            # +1: always-1 lane folds b1 into w1
    Hp = _round_up(hidden_dim + 1, 128)    # +1: always-1 lane folds b2 into w2
    Fp = _round_up(feature_dim, 128)

    # Feature tile: largest multiple of 128 dividing Fp (<= 2048) whose
    # double-buffered bf16 W2 tile + f32 out tile fit a ~16 MiB stream budget.
    budget = 16 * 1024 * 1024
    per_lane = 2 * (Hp * 2 + batch_hint * 4)
    tn_cap = max(128, (budget // per_lane) // 128 * 128)
    TN = 128
    for cand in range(min(Fp, 2048, tn_cap), 127, -128):
        if Fp % cand == 0:
            TN = cand
            break

    w1 = jnp.zeros((Kp, Hp), jnp.float32)
    w1 = w1.at[:k_in, :hidden_dim].set(raw["w1"].astype(jnp.float32))
    w1 = w1.at[k_in, :hidden_dim].set(raw["b1"].astype(jnp.float32))   # folded b1

    bn = jnp.zeros((8, Hp), jnp.float32)
    bn = bn.at[0, :hidden_dim].set(raw["gamma"].astype(jnp.float32))
    bn = bn.at[1, :hidden_dim].set(raw["beta"].astype(jnp.float32))

    # fc2 weight with b2 folded as row `hidden_dim`; pre-tiled tile-major so
    # each [Hp, TN] tile is contiguous in HBM, streamed in bf16.
    w2 = jnp.zeros((Hp, Fp), jnp.float32)
    w2 = w2.at[:hidden_dim, :feature_dim].set(raw["w2"].astype(jnp.float32))
    w2 = w2.at[hidden_dim, :feature_dim].set(raw["b2"].astype(jnp.float32))
    w2 = w2.reshape(Hp, Fp // TN, TN).transpose(1, 0, 2).astype(jnp.bfloat16)

    return {
        "w1": w1, "bn": bn, "w2": w2,
        "noise_dim": noise_dim, "num_classes": num_classes,
        "hidden_dim": hidden_dim, "feature_dim": feature_dim,
        "k_in": k_in, "Kp": Kp, "Hp": Hp, "Fp": Fp, "TN": TN,
    }


def generative_forward(labels, eps, packed):
    """labels: [B] int32, eps: [B, noise_dim] f32 (the torch.rand noise)."""
    B = labels.shape[0]
    noise_dim = packed["noise_dim"]
    hidden_dim = packed["hidden_dim"]
    feature_dim = packed["feature_dim"]
    k_in, Kp, Hp, Fp, TN = (packed["k_in"], packed["Kp"], packed["Hp"],
                            packed["Fp"], packed["TN"])

    grid = (Fp // TN,)

    # Labels shifted by +noise_dim so the lane-iota compare lands the one-hot
    # in the concat position; noise zero-padded to Kp lanes with a 1.0 at lane
    # k_in to fold the fc1 bias into the fc1 matmul.
    labels_in = (labels.astype(jnp.int32) + noise_dim).reshape(B, 1)
    eps_in = jnp.zeros((B, Kp), jnp.float32)
    eps_in = eps_in.at[:, :noise_dim].set(eps.astype(jnp.float32))
    eps_in = eps_in.at[:, k_in].set(1.0)

    # Size the scoped-VMEM request from the actual footprint (+ headroom); the
    # default scoped limit is hit well before the physical limit at large TN.
    vmem_bytes = (
        2 * (Hp * TN * 2)            # streamed bf16 W2 tiles (double-buffered)
        + 2 * (B * TN * 4)           # f32 out tiles (double-buffered)
        + 2 * (Kp * Hp * 4 + 8 * Hp * 4 + B * Kp * 4 + B * 128 * 4)  # resident
    )
    vmem_limit = int(min(max(vmem_bytes + (4 << 20), 16 << 20), 48 << 20))

    out_padded = pl.pallas_call(
        functools.partial(generative_kernel, one_col=hidden_dim),
        out_shape=jax.ShapeDtypeStruct((B, Fp), jnp.float32),
        grid_spec=pltpu.PrefetchScalarGridSpec(
            num_scalar_prefetch=0,
            grid=grid,
            in_specs=[
                pl.BlockSpec((B, 1), lambda j: (0, 0)),        # labels (resident)
                pl.BlockSpec((B, Kp), lambda j: (0, 0)),       # padded noise
                pl.BlockSpec((Kp, Hp), lambda j: (0, 0)),      # fused fc1 weight
                pl.BlockSpec((8, Hp), lambda j: (0, 0)),       # gamma/beta pack
                pl.BlockSpec((None, Hp, TN), lambda j: (j, 0, 0)),  # W2 tile
            ],
            out_specs=pl.BlockSpec((B, TN), lambda j: (0, j)),
        ),
        compiler_params=pltpu.CompilerParams(
            # The hidden activation is recomputed per feature tile, so the
            # feature axis carries no state -> v7x megacore may shard it.
            dimension_semantics=("parallel",),
            vmem_limit_bytes=vmem_limit,
        ),
    )(labels_in, eps_in, packed["w1"], packed["bn"], packed["w2"])

    return out_padded[:, :feature_dim]


def reference_forward(labels, eps, raw, num_classes):
    """Pure-JAX reference matching the PyTorch module's forward (train mode)."""
    onehot = jax.nn.one_hot(labels, num_classes, dtype=jnp.float32)
    z = jnp.concatenate([eps, onehot], axis=1)
    z1 = z @ raw["w1"] + raw["b1"]
    mean = jnp.mean(z1, axis=0)
    var = jnp.mean((z1 - mean) ** 2, axis=0)
    zn = (z1 - mean) / jnp.sqrt(var + 1e-5) * raw["gamma"] + raw["beta"]
    h = jnp.maximum(zn, 0.0)
    return h @ raw["w2"] + raw["b2"]


if __name__ == "__main__":
    noise_dim, num_classes, hidden_dim, feature_dim = 16, 10, 32, 32
    batch = 8

    key = jax.random.PRNGKey(0)
    kp, kl, ke = jax.random.split(key, 3)

    raw = init_raw_params(kp, noise_dim, num_classes, hidden_dim, feature_dim)
    packed = pack_params(raw, noise_dim, num_classes, batch_hint=batch)

    labels = jax.random.randint(kl, (batch,), 0, num_classes, dtype=jnp.int32)
    # torch.rand -> U[0, 1) noise, generated deterministically here (glue)
    eps = jax.random.uniform(ke, (batch, noise_dim), jnp.float32)

    out = generative_forward(labels, eps, packed)
    jax.block_until_ready(out)
    assert out.shape == (batch, feature_dim) and out.dtype == jnp.float32

    ref = reference_forward(labels, eps, raw, num_classes)
    # W2 streams in bf16 (perf change) -> compare at bf16-weight tolerance.
    assert jnp.allclose(out, ref, rtol=2e-2, atol=2e-2), (
        float(jnp.max(jnp.abs(out - ref))))
    print("KERNEL_OK")
</pallas_src>

<mosaic_0001>
module attributes {stable_mosaic.version = 11 : i64} {
  func.func @generative_kernel(%arg0: i32, %arg1: memref<8x1xi32, #tpu.memory_space<vmem>>, %arg2: memref<8x32xf32, #tpu.memory_space<vmem>>, %arg3: memref<32x128xf32, #tpu.memory_space<vmem>>, %arg4: memref<8x128xf32, #tpu.memory_space<vmem>>, %arg5: memref<1x128x128xbf16, #tpu.memory_space<vmem>>, %arg6: memref<8x128xf32, #tpu.memory_space<vmem>>) attributes {dimension_semantics = [#tpu.dimension_semantics<parallel>], iteration_bounds = array<i64: 1>, scalar_prefetch = 0 : i64, scratch_operands = 0 : i64, tpu.core_type = #tpu.core_type<tc>, window_params = [{pipeline_mode = #tpu.pipeline_mode<synchronous>, transform_indices = @transform_0, window_bounds = array<i64: 8, 1>}, {pipeline_mode = #tpu.pipeline_mode<synchronous>, transform_indices = @transform_1, window_bounds = array<i64: 8, 32>}, {pipeline_mode = #tpu.pipeline_mode<synchronous>, transform_indices = @transform_2, window_bounds = array<i64: 32, 128>}, {pipeline_mode = #tpu.pipeline_mode<synchronous>, transform_indices = @transform_3, window_bounds = array<i64: 8, 128>}, {transform_indices = @transform_4, window_bounds = array<i64: 1, 128, 128>}, {transform_indices = @transform_5, window_bounds = array<i64: 8, 128>}]} {
    %0 = tpu.iota {dimensions = array<i32: 1>} : vector<8x32xi32>
    %c0 = arith.constant 0 : index
    %c0_0 = arith.constant 0 : index
    %1 = vector.load %arg2[%c0, %c0_0] : memref<8x32xf32, #tpu.memory_space<vmem>>, vector<8x32xf32>
    %c0_1 = arith.constant 0 : index
    %c0_2 = arith.constant 0 : index
    %2 = vector.load %arg1[%c0_1, %c0_2] : memref<8x1xi32, #tpu.memory_space<vmem>>, vector<8x1xi32>
    %3 = vector.broadcast %2 : vector<8x1xi32> to vector<8x32xi32>
    %4 = arith.cmpi eq, %0, %3 : vector<8x32xi32>
    %5 = arith.extui %4 : vector<8x32xi1> to vector<8x32xi32>
    %6 = arith.sitofp %5 : vector<8x32xi32> to vector<8x32xf32>
    %7 = arith.addf %1, %6 : vector<8x32xf32>
    %c0_3 = arith.constant 0 : index
    %c0_4 = arith.constant 0 : index
    %8 = vector.load %arg3[%c0_3, %c0_4] : memref<32x128xf32, #tpu.memory_space<vmem>>, vector<32x128xf32>
    %cst = arith.constant dense<0.000000e+00> : vector<8x128xf32>
    %9 = tpu.matmul %7, %8, %cst {dimension_numbers = #tpu.dot_dimension_numbers<[1], [0], [0], [1], [0, 0, 1, 1], [], []>} : vector<8x32xf32>, vector<32x128xf32>, vector<8x128xf32> -> vector<8x128xf32>
    %cst_5 = arith.constant dense<0.000000e+00> : vector<128xf32>
    %10 = vector.multi_reduction <add>, %9, %cst_5 [0] : vector<8x128xf32> to vector<128xf32>
    %11 = vector.shape_cast %10 : vector<128xf32> to vector<1x128xf32>
    %cst_6 = arith.constant 8.000000e+00 : f32
    %12 = vector.broadcast %cst_6 : f32 to vector<1x128xf32>
    %13 = arith.divf %11, %12 : vector<1x128xf32>
    %14 = vector.broadcast %13 : vector<1x128xf32> to vector<8x128xf32>
    %15 = arith.subf %9, %14 : vector<8x128xf32>
    %16 = arith.mulf %15, %15 : vector<8x128xf32>
    %cst_7 = arith.constant dense<0.000000e+00> : vector<128xf32>
    %17 = vector.multi_reduction <add>, %16, %cst_7 [0] : vector<8x128xf32> to vector<128xf32>
    %18 = vector.shape_cast %17 : vector<128xf32> to vector<1x128xf32>
    %cst_8 = arith.constant 8.000000e+00 : f32
    %19 = vector.broadcast %cst_8 : f32 to vector<1x128xf32>
    %20 = arith.divf %18, %19 : vector<1x128xf32>
    %21 = vector.broadcast %13 : vector<1x128xf32> to vector<8x128xf32>
    %22 = arith.subf %9, %21 : vector<8x128xf32>
    %cst_9 = arith.constant 9.99999974E-6 : f32
    %23 = vector.broadcast %cst_9 : f32 to vector<1x128xf32>
    %24 = arith.addf %20, %23 : vector<1x128xf32>
    %25 = math.rsqrt %24 : vector<1x128xf32>
    %26 = vector.broadcast %25 : vector<1x128xf32> to vector<8x128xf32>
    %27 = arith.mulf %22, %26 : vector<8x128xf32>
    %c0_10 = arith.constant 0 : index
    %c0_11 = arith.constant 0 : index
    %28 = vector.load %arg4[%c0_10, %c0_11] : memref<8x128xf32, #tpu.memory_space<vmem>>, vector<1x128xf32>
    %29 = vector.broadcast %28 : vector<1x128xf32> to vector<8x128xf32>
    %30 = arith.mulf %27, %29 : vector<8x128xf32>
    %c1 = arith.constant 1 : index
    %c0_12 = arith.constant 0 : index
    %31 = vector.load %arg4[%c1, %c0_12] : memref<8x128xf32, #tpu.memory_space<vmem>>, vector<1x128xf32>
    %32 = vector.broadcast %31 : vector<1x128xf32> to vector<8x128xf32>
    %33 = arith.addf %30, %32 : vector<8x128xf32>
    %cst_13 = arith.constant 0.000000e+00 : f32
    %34 = vector.broadcast %cst_13 : f32 to vector<8x128xf32>
    %35 = arith.maximumf %33, %34 : vector<8x128xf32>
    %36 = tpu.iota {dimensions = array<i32: 1>} : vector<8x128xi32>
    %c32_i32 = arith.constant 32 : i32
    %37 = vector.broadcast %c32_i32 : i32 to vector<8x128xi32>
    %38 = arith.cmpi eq, %36, %37 : vector<8x128xi32>
    %cst_14 = arith.constant 1.000000e+00 : f32
    %39 = vector.broadcast %cst_14 : f32 to vector<8x128xf32>
    %40 = arith.select %38, %39, %35 : vector<8x128xi1>, vector<8x128xf32>
    %41 = arith.truncf %40 : vector<8x128xf32> to vector<8x128xbf16>
    %c0_15 = arith.constant 0 : index
    %c0_16 = arith.constant 0 : index
    %c0_17 = arith.constant 0 : index
    %42 = vector.load %arg5[%c0_15, %c0_16, %c0_17] : memref<1x128x128xbf16, #tpu.memory_space<vmem>>, vector<1x128x128xbf16>
    %43 = vector.shape_cast %42 : vector<1x128x128xbf16> to vector<128x128xbf16>
    %cst_18 = arith.constant dense<0.000000e+00> : vector<8x128xf32>
    %44 = tpu.matmul %41, %43, %cst_18 {dimension_numbers = #tpu.dot_dimension_numbers<[1], [0], [0], [1], [0, 0, 1, 1], [], []>} : vector<8x128xbf16>, vector<128x128xbf16>, vector<8x128xf32> -> vector<8x128xf32>
    %c0_19 = arith.constant 0 : index
    %c0_20 = arith.constant 0 : index
    %45 = vector.load %arg6[%c0_19, %c0_20] : memref<8x128xf32, #tpu.memory_space<vmem>>, vector<8x128xf32>
    tpu.vector_store %arg6[%c0_19, %c0_20], %44 {strides = array<i32>} : memref<8x128xf32, #tpu.memory_space<vmem>>, vector<8x128xf32>,
    return
  }
  func.func @transform_0(%arg0: i32) -> (i32, i32) {
    %c0_i32 = arith.constant 0 : i32
    %c0_i32_0 = arith.constant 0 : i32
    %c0_i32_1 = arith.constant 0 : i32
    return %c0_i32, %c0_i32_0 : i32, i32
  }
  func.func @transform_1(%arg0: i32) -> (i32, i32) {
    %c0_i32 = arith.constant 0 : i32
    %c0_i32_0 = arith.constant 0 : i32
    %c0_i32_1 = arith.constant 0 : i32
    return %c0_i32, %c0_i32_0 : i32, i32
  }
  func.func @transform_2(%arg0: i32) -> (i32, i32) {
    %c0_i32 = arith.constant 0 : i32
    %c0_i32_0 = arith.constant 0 : i32
    %c0_i32_1 = arith.constant 0 : i32
    return %c0_i32, %c0_i32_0 : i32, i32
  }
  func.func @transform_3(%arg0: i32) -> (i32, i32) {
    %c0_i32 = arith.constant 0 : i32
    %c0_i32_0 = arith.constant 0 : i32
    %c0_i32_1 = arith.constant 0 : i32
    return %c0_i32, %c0_i32_0 : i32, i32
  }
  func.func @transform_4(%arg0: i32) -> (i32, i32, i32) {
    %c0_i32 = arith.constant 0 : i32
    %c0_i32_0 = arith.constant 0 : i32
    %c0_i32_1 = arith.constant 0 : i32
    return %arg0, %c0_i32, %c0_i32_0 : i32, i32, i32
  }
  func.func @transform_5(%arg0: i32) -> (i32, i32) {
    %c0_i32 = arith.constant 0 : i32
    %c0_i32_0 = arith.constant 0 : i32
    return %c0_i32, %arg0 : i32, i32
  }
}

</mosaic_0001>

<bundles_post_ra>
// kernel: tpu_custom_call.1
= control target key start
LH: loop header
LB: loop body
LE: loop exit
PB: predicated region body
PF: predicated region fallthrough
CT: control target
= control target key end

     0   :  { %10 = vsyncpa [#allocation3], 0  ;;  %s531_s0 = inlined_call_operand.vmem [shape: s32[8,1], index: 0, kind: input, shape index: {}]   ;;  %s532_s1 = inlined_call_operand.vmem [shape: f32[8,32], index: 1, kind: input, shape index: {}]   ;;  %s533_s2 = inlined_call_operand.hbm [shape: f32[32,128], index: 2, kind: input, shape index: {}]   ;;  %s534_s3 = inlined_call_operand.hbm [shape: f32[8,128], index: 3, kind: input, shape index: {}]   ;;  %s535_s4 = inlined_call_operand.hbm [shape: bf16[1,128,128], index: 4, kind: input, shape index: {}]   ;;  %s536_s5 = inlined_call_operand.hbm [shape: f32[8,128], index: 5, kind: output, shape index: {}]  }
   0x1   :  { %11 = vsyncpa [#allocation6], 0 }
   0x2   :  { %12 = vsyncpa [#allocation4], 0  ;;  %s472_s18 = smov [#allocation5]   ;;  %s473_s20 = smov [#allocation2]  }
   0x3   :  { %s35_s19 = sshll.u32 %s472_s18, 4  ;;  %s22_s21 = sshll.u32 %s473_s20, 4  ;;  %s36_s19 = int_to_ptr.vmem [resolvable:$true] %s35_s19  ;;  %s23_s21 = int_to_ptr.vmem [resolvable:$true] %s22_s21 }
   0x4   :  { %s394_s22 = scalar_lea.vmem %s36_s19, 128  ;;  %p399_p1 = scmp.lt.s32.totalorder %s36_s19, %s36_s19 }
   0x5   :  { %p395_p0 = scmp.ne.s32.totalorder %s36_s19, %s394_s22  ;;  %p400_p2 = scmp.lt.s32.totalorder %s394_s22, %s394_s22 }
   0x7   :  { %p401_p3 = por %p400_p2, %p399_p1 }
   0x9   :  { %p402_p4 = pnand %p401_p3, %p395_p0 }
   0xb   :  { %405 = shalt.err (!%p402_p4)
}
   0xc   :  { %38 = dma.hbm_to_vmem [thread:$0]  %s534_s3, 128, %s36_s19, [#allocation6]  }
   0xd   :  { %s414_s25 = scalar_lea.vmem %s23_s21, 512  ;;  %p419_p6 = scmp.lt.s32.totalorder %s23_s21, %s23_s21 }
   0xe   :  { %p415_p5 = scmp.ne.s32.totalorder %s23_s21, %s414_s25  ;;  %p420_p7 = scmp.lt.s32.totalorder %s414_s25, %s414_s25 }
  0x10   :  { %p421_p8 = por %p420_p7, %p419_p6 }
  0x12   :  { %p422_p9 = pnand %p421_p8, %p415_p5 }
  0x14   :  { %425 = shalt.err (!%p422_p9)
}
  0x15   :  { %s474_s26 = smov 128   ;;  %s475_s27 = smov 8  }
  0x16   :  { %28 = dma.hbm_to_vmem [thread:$0]  %s533_s2, 512, %s23_s21, [#allocation3], %s474_s26, %s474_s26, %s475_s27  }
  0x17   :  { %s476_s30 = smov [#allocation7]  }
  0x18   :  { %s44_s6 = sshll.u32 %s476_s30, 4  ;;  %s45_s6 = int_to_ptr.vmem [resolvable:$true] %s44_s6 }
  0x19   :  { %s434_s7 = scalar_lea.vmem %s45_s6, 1024  ;;  %p439_p11 = scmp.lt.s32.totalorder %s45_s6, %s45_s6 }
  0x1a   :  { %p435_p10 = scmp.ne.s32.totalorder %s45_s6, %s434_s7  ;;  %p440_p12 = scmp.lt.s32.totalorder %s434_s7, %s434_s7 }
  0x1c   :  { %p441_p13 = por %p440_p12, %p439_p11 }
  0x1e   :  { %p442_p0 = pnand %p441_p13, %p435_p10 }
  0x20   :  { %445 = shalt.err (!%p442_p0)
}
  0x21   :  { %s477_s3 = smov 64   ;;  %s478_s8 = smov 4  }
  0x22   :  { %50 = dma.hbm_to_vmem [thread:$0]  %s535_s4, 1024, %s45_s6, [#allocation6], %s477_s3, %s477_s3, %s478_s8  }
  0x23   :  { %466 = dma.done.wait [#allocation3], 512  }
  0x24   :  { %467 = vsyncadd [#allocation3], 4294966784 }
  0x25   :  { %468 = dma.done.wait [#allocation6], 1152  }
  0x26   :  { %469 = vsyncadd [#allocation6], 4294966144  ;;  %v479_v0 = vmov 0   ;;  %v480_v1 = vmov 0.0   ;;  %v64_v2 = vld [vmem:[%s531_s0] sm:$0xff]  ;;  %v75_v3 = vld [vmem:[#allocation2 + $0x18] sm:$0xff]  ;;  %v61_v7 = vlaneseq }
  0x27   :  { %375 = vset.pattern.permute.xlu0 %v479_v0  ;;  %333 = vmatprep.subr.mxu0 %v480_v1  ;;  %v74_v4 = vld [vmem:[#allocation2 + $0x10] sm:$0xff]  ;;  %vm481_vm0 = vmmov 0   ;;  %v73_v5 = vld [vmem:[#allocation2 + $0x8] sm:$0xff]  ;;  %v72_v6 = vld [vmem:[#allocation2] sm:$0xff]  ;;  %vm76_vm2 = vcmask 261120  }
  0x28   :  { %344 = vmatprep.subr.bf16.mxu1 %v480_v1  ;;  %341 = vmatprep.mubr.msk.f32.mxu0 %vm481_vm0, %v480_v1  ;;  %v62_v8 = vand.u32 127, %v61_v7  ;;  %v63_v10 = vld [vmem:[%s532_s1] sm:$0xff]  ;;  %v377_v14 = vld [vmem:[#allocation7 + $0x30] sm:$0xff]   ;;  %v378_v15 = vld [vmem:[#allocation7 + $0x28] sm:$0xff]   ;;  %s482_s1 = smov [#allocation8]  }
  0x29   :  { %360 = vmatprep.mubr.msk.bf16.mxu1 %vm481_vm0, %v480_v1  ;;  %66 = vperm.xlu0 %375, %v64_v2   ;;  %v376_v13 = vld [vmem:[#allocation7 + $0x38] sm:$0xff]   ;;  %v379_v16 = vld [vmem:[#allocation7 + $0x20] sm:$0xff]   ;;  %v381_v18 = vld [vmem:[#allocation7 + $0x10] sm:$0xff]   ;;  %s297_s12 = sshll.u32 %s482_s1, 4  ;;  %s298_s12 = int_to_ptr.vmem [resolvable:$true] %s297_s12 }
  0x2a   :  { %334 = vmatpush3.msra.mxu0 %v75_v3  ;;  %345 = vmatpush3.bf16.msra.mxu1 %v376_v13  ;;  %v380_v17 = vld [vmem:[#allocation7 + $0x18] sm:$0xff]   ;;  %v382_v19 = vld [vmem:[#allocation7 + $0x8] sm:$0xff]   ;;  %v383_v20 = vld [vmem:[#allocation7] sm:$0xff]   ;;  %vm183_vm3 = vcmp.eq.s32.totalorder %v62_v8, 32  ;;  %s446_s13 = scalar_lea.vmem %s298_s12, 128  ;;  %p451_p2 = scmp.lt.s32.totalorder %s298_s12, %s298_s12 }
  0x2b   :  { %335 = vmatprep.subr.mxu0 %v480_v1  ;;  %346 = vmatprep.subr.bf16.mxu1 %v480_v1  ;;  %v309_v41 = vld [vmem:[#allocation5] ss:$0 sm:$0xff]  ;;  %v310_v43 = vld [vmem:[#allocation5 + $0x1] ss:$0 sm:$0xff]  ;;  %p447_p1 = scmp.ne.s32.totalorder %s298_s12, %s446_s13  ;;  %p452_p3 = scmp.lt.s32.totalorder %s446_s13, %s446_s13 }
  0x2c   :  { %336 = vmatpush3.msra.mxu0 %v74_v4 }
  0x2d   :  { %337 = vmatprep.subr.mxu0 %v480_v1  ;;  %p453_p4 = por %p452_p3, %p451_p2 }
  0x2e   :  { %338 = vmatpush3.msra.mxu0 %v73_v5  ;;  %347 = vmatpush3.bf16.msra.mxu1 %v377_v14 }
  0x2f   :  { %339 = vmatprep.subr.mxu0 %v480_v1  ;;  %348 = vmatprep.subr.bf16.mxu1 %v480_v1  ;;  %p454_p5 = pnand %p453_p4, %p447_p1 }
  0x30   :  { %340 = vmatpush3.msra.mxu0 %v72_v6 }
  0x32   :  { %349 = vmatpush3.bf16.msra.mxu1 %v378_v15 }
  0x33   :  { %350 = vmatprep.subr.bf16.mxu1 %v480_v1 }
  0x36   :  { %351 = vmatpush3.bf16.msra.mxu1 %v379_v16 }
  0x37   :  { %352 = vmatprep.subr.bf16.mxu1 %v480_v1 }
  0x3a   :  { %353 = vmatpush3.bf16.msra.mxu1 %v380_v17 }
  0x3b   :  { %354 = vmatprep.subr.bf16.mxu1 %v480_v1 }
  0x3e   :  { %355 = vmatpush3.bf16.msra.mxu1 %v381_v18 }
  0x3f   :  { %356 = vmatprep.subr.bf16.mxu1 %v480_v1 }
  0x42   :  { %357 = vmatpush3.bf16.msra.mxu1 %v382_v19 }
  0x43   :  { %358 = vmatprep.subr.bf16.mxu1 %v480_v1 }
  0x46   :  { %359 = vmatpush3.bf16.msra.mxu1 %v383_v20 }
  0xa4   :  { %v67_v9 = vpop.permute.xlu0 %66 }
  0xa5   :  { %vm68_vm1 = vcmp.eq.s32.totalorder %v62_v8, %v67_v9 }
  0xa6   :  { %v307_v11 = vsel %vm68_vm1, 1.0, %v480_v1 }
  0xa7   :  { %v71_v12 = vadd.f32 %v307_v11, %v63_v10 }
  0xa9   :  { %342 = vmatmul.mubr.msk.f32.vlgmr.msra.gmra.mxu0 %vm76_vm2, %v71_v12 }
 0x169   :  { %v146_v21 = vpop.f32.mrf.mxu0 }
 0x16a   :  { %v150_v22 = vrot.slane %v146_v21, 4 }
 0x16b   :  { %v343_v23 = vpop.f32.mrf.mxu0 }
 0x16c   :  { %v151_v24 = vadd.f32 %v150_v22, %v146_v21 }
 0x16e   :  { %v152_v25 = vrot.slane %v151_v24, 2 }
 0x170   :  { %v153_v26 = vadd.f32 %v152_v25, %v151_v24 }
 0x172   :  { %v154_v27 = vrot.slane %v153_v26, 1 }
 0x174   :  { %v155_v28 = vadd.f32 %v154_v27, %v153_v26 }
 0x176   :  { %v157_v29 = vmul.f32 0.125, %v155_v28 }
 0x178   :  { %v158_v30 = vsub.f32 %v146_v21, %v157_v29 }
 0x17a   :  { %v159_v31 = vmul.f32 %v158_v30, %v158_v30 }
 0x17c   :  { %v160_v32 = vrot.slane %v159_v31, 4 }
 0x17e   :  { %v161_v33 = vadd.f32 %v160_v32, %v159_v31 }
 0x180   :  { %v162_v34 = vrot.slane %v161_v33, 2 }
 0x182   :  { %v163_v35 = vadd.f32 %v162_v34, %v161_v33 }
 0x184   :  { %v164_v36 = vrot.slane %v163_v35, 1 }
 0x186   :  { %v165_v37 = vadd.f32 %v164_v36, %v163_v35 }
 0x188   :  { %v166_v38 = vmul.f32 0.125, %v165_v37 }
 0x18a   :  { %v167_v39 = vadd.f32 1e-05, %v166_v38 }
 0x18c   :  { %384 = vrsqrt.f32 %v167_v39 }
 0x199   :  { %v385_v40 = vpop.eup %384 }
 0x19a   :  { %v169_v42 = vmul.f32 %v385_v40, %v158_v30 }
 0x19c   :  { %v175_v44 = vmul.f32 %v309_v41, %v169_v42 }
 0x19e   :  { %v181_v45 = vadd.f32 %v310_v43, %v175_v44 }
 0x1a0   :  { %v182_v46 = vmax.f32 %v181_v45, 0.0 }
 0x1a2   :  { %v184_v47 = vsel %vm183_vm3, 1.0, %v182_v46 }
 0x1a3   :  { %v185_v48 = vpack.c.bf16 %v184_v47, %v184_v47 }
 0x1a5   :  { %361 = vmatmul.mubr.bf16.vlgmr.msra.gmra.mxu1 %v185_v48 }
 0x265   :  { %v284_v49 = vpop.f32.mrf.mxu1 }
 0x266   :  { %290 = vst [vmem:[#allocation8] sm:$0xff] %v284_v49 }
 0x267   :  { %v362_v50 = vpop.f32.mrf.mxu1 }
 0x268   :  { %457 = shalt.err (!%p454_p5)
}
 0x269   :  { %300 = dma.vmem_to_hbm [thread:$0]  %s298_s12, 128, %s536_s5, [#allocation4]   ;;  %v287_v51 = vpop.f32.mrf.mxu1 }
 0x26b   :  { %v363_v52 = vpop.f32.mrf.mxu1 }
 0x26c   :  { %470 = dma.done.wait [#allocation4], 128  }
 0x26d   :  { %471 = vsyncadd [#allocation4], 4294967168 }
 0x26e   :  { %304 = vsyncpa [#allocation3], 1 }
 0x26f   :  { %305 = vsyncpa [#allocation6], 1 }
 0x270   :  { %306 = vsyncpa [#allocation4], 1 }

</bundles_post_ra>
